<compile_context>
chip_gen: v7x
topology: tpu7x:2x2x1
jax: 0.10.0
libtpu: 0.0.40
codegen_flags: <defaults>
</compile_context>

<pallas_src>
import jax
import jax.numpy as jnp
from jax import lax
from jax.experimental import pallas as pl
from jax.experimental.pallas import tpu as pltpu

BN_EPS = 1e-5
_LANE = 128
_SUBLANE = 8


def _round_up(x, m):
    return (x + m - 1) // m * m


def _apply_activation(y, activ):
    if activ == "relu":
        return jnp.maximum(y, 0.0)
    if activ == "tanh":
        return jnp.tanh(y)
    if activ == "sigmoid":
        return jax.nn.sigmoid(y)
    if activ == "identity":
        return y
    raise NotImplementedError(activ)


def _vmem_budget_bytes():
    """Per-generation VMEM budget for tile sizing + matching Mosaic limit."""
    phys = None
    try:
        info = pltpu.get_tpu_info()
        phys = getattr(info, "vmem_capacity_bytes", None)
    except Exception:
        phys = None
    if not phys:
        phys = 64 * 1024 * 1024                     # conservative (v7x per-TC VMEM)
    budget = min((int(phys) * 5) // 8, 96 * 1024 * 1024)   # 80 MiB on v5e/v6e, 40 MiB on v7x
    limit = int(min(budget + (16 << 20), int(phys) - (2 << 20)))
    limit = max(limit, budget)
    return int(budget), int(limit)


def _choose_tiles(m, f_in, f_out, itemsize, vmem_budget):
    """Pick (TM, TN, TK) and padded dims. Lane-dense, VMEM-budgeted, M-clamped."""
    # K tile: full (padded) in_features up to 512, then pad K to a TK multiple.
    tk = min(_round_up(f_in, _LANE), 512)
    f_in_pad = _round_up(f_in, tk)
    # N tile: full (padded) out_features up to 512 (wide unmasked stores).
    tn = min(_round_up(f_out, _LANE), 512)
    f_out_pad = _round_up(f_out, tn)
    # M tile: from remaining double-buffered budget, clamped to the real batch.
    fixed = 2 * tk * tn * itemsize + 2 * tn * 4            # W tiles (2 bufs) + bias
    per_row = 2 * tk * itemsize + 3 * tn * 4               # x (2 bufs) + out (2 bufs) + acc
    tm_cap = max(_SUBLANE, (vmem_budget - fixed) // max(per_row, 1))
    tm = min(1024, int(tm_cap), _round_up(m, _SUBLANE))
    tm = max(_SUBLANE, tm // _SUBLANE * _SUBLANE)
    m_pad = _round_up(m, tm)
    # Megacore: if the grid collapsed to one block, split N so both TCs work.
    if m_pad // tm == 1 and f_out_pad // tn == 1 and tn >= 256:
        tn //= 2
    return tm, tn, tk, m_pad, f_in_pad, f_out_pad


# ---------------------------------------------------------------------------
# Kernel 1: per-feature BN statistics (sum / sum-of-squares), single pass,
# accumulated in a grid-resident f32 (2, F) block with one store per step.
# ---------------------------------------------------------------------------
def bn_stats_kernel(x_ref, stats_ref):
    @pl.when(pl.program_id(0) == 0)
    def _():
        stats_ref[...] = jnp.zeros_like(stats_ref)

    x = x_ref[...].astype(jnp.float32)
    s1 = jnp.sum(x, axis=0, keepdims=True)
    s2 = jnp.sum(x * x, axis=0, keepdims=True)
    stats_ref[...] += jnp.concatenate([s1, s2], axis=0)


# ---------------------------------------------------------------------------
# Kernel 2: y = activ(x @ W_eff + b_eff), K-tiled with an f32 accumulator.
# (BN already folded into W_eff / b_eff in the wrapper.)
# ---------------------------------------------------------------------------
def make_linear_act_kernel(activ):
    def kernel(x_ref, w_ref, b_ref, o_ref, acc_ref):
        @pl.when(pl.program_id(2) == 0)
        def _():
            acc_ref[...] = jnp.zeros_like(acc_ref)

        acc_ref[...] += jnp.dot(x_ref[...], w_ref[...],
                                preferred_element_type=jnp.float32)

        @pl.when(pl.program_id(2) == pl.num_programs(2) - 1)
        def _():
            y = acc_ref[...] + b_ref[...]
            o_ref[...] = _apply_activation(y, activ).astype(o_ref.dtype)
    return kernel


# ---------------------------------------------------------------------------
# Wrapper: BDLA forward
# ---------------------------------------------------------------------------
def bdla_forward(x, weight, bias, gamma=None, beta=None, *,
                 use_bn=False, drop_rate=0.0, training=False, activ="relu",
                 mxu_dtype=jnp.bfloat16,
                 tile_m=None, tile_n=None, tile_k=None):
    """Forward of BDLA: (BatchNorm1d -> Dropout ->) Linear -> activation.

    x:      (M, in_features)            float32
    weight: (out_features, in_features) float32 (PyTorch nn.Linear layout)
    bias:   (out_features,)
    gamma/beta: (in_features,) BN affine params (only used if use_bn=True)
    returns (M, out_features) float32
    """
    if training and drop_rate > 0.0:
        # TODO(synk): training-mode Dropout (random mask + 1/(1-p) scaling via
        # pltpu.prng_seed/prng_random_bits) not implemented; inference-mode
        # Dropout is identity and handled exactly.
        raise NotImplementedError("training-mode Dropout not implemented")

    m, f_in = x.shape
    f_out = weight.shape[0]
    itemsize = jnp.dtype(mxu_dtype).itemsize
    vmem_budget, vmem_limit = _vmem_budget_bytes()

    if tile_m is not None:
        tm, tn, tk = int(tile_m), int(tile_n), int(tile_k)   # explicit override (testing/tuning)
        f_in_pad = _round_up(f_in, tk)
        f_out_pad = _round_up(f_out, tn)
        m_pad = _round_up(m, tm)
    else:
        tm, tn, tk, m_pad, f_in_pad, f_out_pad = _choose_tiles(
            m, f_in, f_out, itemsize, vmem_budget)

    # Single padded, lane-dense copy of x in the MXU feed dtype (cast before pad).
    x_p = jnp.pad(x.astype(mxu_dtype),
                  ((0, m_pad - m), (0, f_in_pad - f_in)))

    # --- BatchNorm1d (training-mode batch stats), folded into weight & bias ---
    if use_bn:
        tm_bn = tm
        while 2 * tm_bn * f_in_pad * itemsize > vmem_budget and tm_bn % 16 == 0:
            tm_bn //= 2                                      # keep multiple of 8, divides m_pad
        stats = pl.pallas_call(
            bn_stats_kernel,
            out_shape=jax.ShapeDtypeStruct((2, f_in_pad), jnp.float32),
            grid=(m_pad // tm_bn,),
            in_specs=[pl.BlockSpec((tm_bn, f_in_pad), lambda i: (i, 0))],
            out_specs=pl.BlockSpec((2, f_in_pad), lambda i: (0, 0)),
            compiler_params=pltpu.CompilerParams(
                dimension_semantics=("arbitrary",),
                vmem_limit_bytes=vmem_limit),
        )(x_p)
        # Padded rows/cols are zero, so dividing by the true M is exact.
        s1 = stats[0, :f_in]
        s2 = stats[1, :f_in]
        mean = s1 / m
        var = jnp.maximum(s2 / m - mean * mean, 0.0)         # f32 single-pass (clamped)
        scale = gamma.astype(jnp.float32) * lax.rsqrt(var + BN_EPS)
        shift = beta.astype(jnp.float32) - mean * scale
        w_t = weight.T.astype(jnp.float32)                   # (f_in, f_out)
        w_eff = w_t * scale[:, None]
        b_eff = bias.astype(jnp.float32) + shift @ w_t
    else:
        w_eff = weight.T.astype(jnp.float32)
        b_eff = bias.astype(jnp.float32)

    w_p = jnp.pad(w_eff.astype(mxu_dtype),
                  ((0, f_in_pad - f_in), (0, f_out_pad - f_out)))
    b_p = jnp.pad(b_eff, (0, f_out_pad - f_out)).reshape(1, f_out_pad)

    grid = (m_pad // tm, f_out_pad // tn, f_in_pad // tk)
    out_p = pl.pallas_call(
        make_linear_act_kernel(activ),
        out_shape=jax.ShapeDtypeStruct((m_pad, f_out_pad), jnp.float32),
        grid=grid,
        in_specs=[
            pl.BlockSpec((tm, tk), lambda i, j, k: (i, k)),
            pl.BlockSpec((tk, tn), lambda i, j, k: (k, j)),   # constant (0,0) when W fits -> resident
            pl.BlockSpec((1, tn), lambda i, j, k: (0, j)),
        ],
        out_specs=pl.BlockSpec((tm, tn), lambda i, j, k: (i, j)),
        scratch_shapes=[pltpu.VMEM((tm, tn), jnp.float32)],
        compiler_params=pltpu.CompilerParams(
            dimension_semantics=("parallel", "parallel", "arbitrary"),
            vmem_limit_bytes=vmem_limit),
    )(x_p, w_p, b_p)

    return out_p[:m, :f_out]


# ---------------------------------------------------------------------------
# Pure-JAX reference matching PyTorch semantics (train-mode BN, Linear, activ)
# ---------------------------------------------------------------------------
def reference_forward(x, weight, bias, gamma=None, beta=None, *,
                      use_bn=False, activ="relu"):
    y = x.astype(jnp.float32)
    if use_bn:
        mean = jnp.mean(y, axis=0)
        var = jnp.mean((y - mean) ** 2, axis=0)              # biased batch var
        y = (y - mean) * lax.rsqrt(var + BN_EPS) * gamma + beta
    y = y @ weight.T.astype(jnp.float32) + bias
    return _apply_activation(y, activ)


if __name__ == "__main__":
    # BDLA(in_features=32, out_features=8, drop_rate=0.0, use_bn=..., activ='relu')
    M, F_IN, F_OUT = 16, 32, 8

    key = jax.random.PRNGKey(0)
    kx, kw, kb, kg, kbeta, k2 = jax.random.split(key, 6)
    x = jax.random.normal(kx, (M, F_IN), dtype=jnp.float32)
    weight = 0.1 * jax.random.normal(kw, (F_OUT, F_IN), dtype=jnp.float32)
    bias = 0.05 * jax.random.normal(kb, (F_OUT,), dtype=jnp.float32)
    gamma = 1.0 + 0.1 * jax.random.normal(kg, (F_IN,), dtype=jnp.float32)
    beta = 0.05 * jax.random.normal(kbeta, (F_IN,), dtype=jnp.float32)

    # Config A: use_bn=True (BN -> Linear -> ReLU), f32 MXU feed -> tight check.
    out_bn = bdla_forward(x, weight, bias, gamma, beta,
                          use_bn=True, activ="relu", mxu_dtype=jnp.float32)
    out_bn = jax.block_until_ready(out_bn)
    ref_bn = reference_forward(x, weight, bias, gamma, beta,
                               use_bn=True, activ="relu")
    assert out_bn.shape == (M, F_OUT)
    assert jnp.allclose(out_bn, ref_bn, atol=1e-4, rtol=1e-4), "BN path mismatch"

    # Config B: module defaults (use_bn=False, drop_rate=0.0): Linear -> ReLU,
    # default bf16 MXU feed -> relaxed tolerance for bf16 quantization.
    out_plain = bdla_forward(x, weight, bias, use_bn=False, activ="relu")
    out_plain = jax.block_until_ready(out_plain)
    ref_plain = reference_forward(x, weight, bias, use_bn=False, activ="relu")
    assert jnp.allclose(out_plain, ref_plain, atol=3e-2, rtol=3e-2), "plain path mismatch"

    # Config C: exercise the K/N-tiled accumulator path with explicit small tiles.
    M2, F_IN2, F_OUT2 = 64, 256, 256
    kx2, kw2, kb2 = jax.random.split(k2, 3)
    x2 = jax.random.normal(kx2, (M2, F_IN2), dtype=jnp.float32)
    w2 = 0.05 * jax.random.normal(kw2, (F_OUT2, F_IN2), dtype=jnp.float32)
    b2 = 0.05 * jax.random.normal(kb2, (F_OUT2,), dtype=jnp.float32)
    out_tiled = bdla_forward(x2, w2, b2, use_bn=False, activ="tanh",
                             mxu_dtype=jnp.float32,
                             tile_m=32, tile_n=128, tile_k=128)
    out_tiled = jax.block_until_ready(out_tiled)
    ref_tiled = reference_forward(x2, w2, b2, use_bn=False, activ="tanh")
    assert jnp.allclose(out_tiled, ref_tiled, atol=1e-4, rtol=1e-4), "tiled path mismatch"

    print("KERNEL_OK")
</pallas_src>

<mosaic_0001>
module attributes {stable_mosaic.version = 11 : i64} {
  func.func @bn_stats_kernel(%arg0: i32, %arg1: memref<16x128xf32, #tpu.memory_space<vmem>>, %arg2: memref<2x128xf32, #tpu.memory_space<vmem>>) attributes {dimension_semantics = [#tpu.dimension_semantics<arbitrary>], iteration_bounds = array<i64: 1>, scalar_prefetch = 0 : i64, scratch_operands = 0 : i64, tpu.core_type = #tpu.core_type<tc>, window_params = [{transform_indices = @transform_0, window_bounds = array<i64: 16, 128>}, {pipeline_mode = #tpu.pipeline_mode<synchronous>, transform_indices = @transform_1, window_bounds = array<i64: 2, 128>}]} {
    %c0_i32 = arith.constant 0 : i32
    %0 = arith.cmpi eq, %arg0, %c0_i32 : i32
    %1 = arith.extui %0 : i1 to i32
    %c0_i32_0 = arith.constant 0 : i32
    %2 = arith.cmpi ne, %1, %c0_i32_0 : i32
    scf.if %2 {
      %cst_7 = arith.constant 0.000000e+00 : f32
      %13 = vector.broadcast %cst_7 : f32 to vector<2x128xf32>
      %c0_8 = arith.constant 0 : index
      %c0_9 = arith.constant 0 : index
      %14 = vector.load %arg2[%c0_8, %c0_9] : memref<2x128xf32, #tpu.memory_space<vmem>>, vector<2x128xf32>
      tpu.vector_store %arg2[%c0_8, %c0_9], %13 {strides = array<i32>} : memref<2x128xf32, #tpu.memory_space<vmem>>, vector<2x128xf32>,
    } else {
    }
    %c0 = arith.constant 0 : index
    %c0_1 = arith.constant 0 : index
    %3 = vector.load %arg1[%c0, %c0_1] : memref<16x128xf32, #tpu.memory_space<vmem>>, vector<16x128xf32>
    %cst = arith.constant dense<0.000000e+00> : vector<128xf32>
    %4 = vector.multi_reduction <add>, %3, %cst [0] : vector<16x128xf32> to vector<128xf32>
    %5 = vector.shape_cast %4 : vector<128xf32> to vector<1x128xf32>
    %6 = arith.mulf %3, %3 : vector<16x128xf32>
    %cst_2 = arith.constant dense<0.000000e+00> : vector<128xf32>
    %7 = vector.multi_reduction <add>, %6, %cst_2 [0] : vector<16x128xf32> to vector<128xf32>
    %8 = vector.shape_cast %7 : vector<128xf32> to vector<1x128xf32>
    %c0_3 = arith.constant 0 : index
    %c0_4 = arith.constant 0 : index
    %9 = vector.load %arg2[%c0_3, %c0_4] : memref<2x128xf32, #tpu.memory_space<vmem>>, vector<2x128xf32>
    %10 = tpu.concatenate %5, %8 in 0 : vector<1x128xf32>, vector<1x128xf32> -> vector<2x128xf32>
    %11 = arith.addf %9, %10 : vector<2x128xf32>
    %c0_5 = arith.constant 0 : index
    %c0_6 = arith.constant 0 : index
    %12 = vector.load %arg2[%c0_5, %c0_6] : memref<2x128xf32, #tpu.memory_space<vmem>>, vector<2x128xf32>
    tpu.vector_store %arg2[%c0_5, %c0_6], %11 {strides = array<i32>} : memref<2x128xf32, #tpu.memory_space<vmem>>, vector<2x128xf32>,
    return
  }
  func.func @transform_0(%arg0: i32) -> (i32, i32) {
    %c0_i32 = arith.constant 0 : i32
    %c0_i32_0 = arith.constant 0 : i32
    return %arg0, %c0_i32 : i32, i32
  }
  func.func @transform_1(%arg0: i32) -> (i32, i32) {
    %c0_i32 = arith.constant 0 : i32
    %c0_i32_0 = arith.constant 0 : i32
    %c0_i32_1 = arith.constant 0 : i32
    return %c0_i32, %c0_i32_0 : i32, i32
  }
}

</mosaic_0001>

<bundles_post_ra>
// kernel: tpu_custom_call.1
= control target key start
LH: loop header
LB: loop body
LE: loop exit
PB: predicated region body
PF: predicated region fallthrough
CT: control target
= control target key end

     0   :  { %6 = vsyncpa [#allocation3], 0  ;;  %s158_s0 = inlined_call_operand.hbm [shape: f32[16,128], index: 0, kind: input, shape index: {}]   ;;  %s159_s1 = inlined_call_operand.hbm [shape: f32[2,128], index: 1, kind: output, shape index: {}]  }
   0x1   :  { %7 = vsyncpa [#allocation4], 0  ;;  %s119_s6 = smov [#allocation2]   ;;  %s71_s10 = scalar_lea.hbm %s158_s0, 256 }
   0x2   :  { %s13_s7 = sshll.u32 %s119_s6, 4  ;;  %p72_p0 = scmp.ne.s32.totalorder %s158_s0, %s71_s10  ;;  %s14_s7 = int_to_ptr.vmem [resolvable:$true] %s13_s7 }
   0x3   :  { %p75_p1 = scmp.lt.u32.totalorder %s71_s10, %s158_s0 }
   0x5   :  { %p77_p2 = pnand %p75_p1, %p72_p0 }
   0x7   :  { %80 = shalt.err (!%p77_p2)
}
   0x8   :  { %s81_s15 = scalar_lea.vmem %s14_s7, 256  ;;  %p86_p4 = scmp.lt.s32.totalorder %s14_s7, %s14_s7 }
   0x9   :  { %p82_p3 = scmp.ne.s32.totalorder %s14_s7, %s81_s15  ;;  %p87_p5 = scmp.lt.s32.totalorder %s81_s15, %s81_s15 }
   0xb   :  { %p88_p6 = por %p87_p5, %p86_p4 }
   0xd   :  { %p89_p7 = pnand %p88_p6, %p82_p3 }
   0xf   :  { %92 = shalt.err (!%p89_p7)
}
  0x10   :  { %s120_s16 = smov 128   ;;  %s121_s17 = smov 8  }
  0x11   :  { %19 = dma.hbm_to_vmem [thread:$0]  %s158_s0, 256, %s14_s7, [#allocation3], %s120_s16, %s120_s16, %s121_s17  }
  0x12   :  { %115 = dma.done.wait [#allocation3], 256  }
  0x13   :  { %116 = vsyncadd [#allocation3], 4294967040  ;;  %v122_v0 = vmov 0.0   ;;  %v28_v1 = vld [vmem:[#allocation2] sm:$0xff]  ;;  %v29_v2 = vld [vmem:[#allocation2 + $0x8] sm:$0xff]  ;;  %vm47_vm0 = vcmask 1040384  }
  0x14   :  { %27 = vst [vmem:[#allocation5] sm:$0x3] %v122_v0  ;;  %v30_v3 = vadd.f32 %v29_v2, %v28_v1  ;;  %v37_v4 = vmul.f32 %v28_v1, %v28_v1  ;;  %v38_v5 = vmul.f32 %v29_v2, %v29_v2  ;;  %s123_s0 = smov [#allocation5]  }
  0x15   :  { %s57_s20 = sshll.u32 %s123_s0, 4  ;;  %s58_s20 = int_to_ptr.vmem [resolvable:$true] %s57_s20 }
  0x16   :  { %v31_v6 = vrot.slane %v30_v3, 4  ;;  %v39_v7 = vadd.f32 %v38_v5, %v37_v4  ;;  %s93_s21 = scalar_lea.vmem %s58_s20, 32  ;;  %p98_p9 = scmp.lt.s32.totalorder %s58_s20, %s58_s20 }
  0x17   :  { %p94_p8 = scmp.ne.s32.totalorder %s58_s20, %s93_s21  ;;  %p99_p10 = scmp.lt.s32.totalorder %s93_s21, %s93_s21 }
  0x18   :  { %v32_v8 = vadd.f32 %v31_v6, %v30_v3  ;;  %v40_v9 = vrot.slane %v39_v7, 4 }
  0x19   :  { %p100_p11 = por %p99_p10, %p98_p9 }
  0x1a   :  { %v33_v10 = vrot.slane %v32_v8, 2  ;;  %v41_v11 = vadd.f32 %v40_v9, %v39_v7 }
  0x1b   :  { %v46_v19 = vld [vmem:[#allocation5] sm:$0x3]  ;;  %p101_p12 = pnand %p100_p11, %p94_p8 }
  0x1c   :  { %v34_v12 = vadd.f32 %v33_v10, %v32_v8  ;;  %v42_v13 = vrot.slane %v41_v11, 2 }
  0x1e   :  { %v35_v14 = vrot.slane %v34_v12, 1  ;;  %v43_v15 = vadd.f32 %v42_v13, %v41_v11 }
  0x20   :  { %v36_v16 = vadd.f32 %v35_v14, %v34_v12  ;;  %v44_v17 = vrot.slane %v43_v15, 1 }
  0x22   :  { %v45_v18 = vadd.f32 %v44_v17, %v43_v15 }
  0x24   :  { %v48_v20 = vsel %vm47_vm0, %v36_v16, %v45_v18 }
  0x25   :  { %v49_v21 = vadd.f32 %v48_v20, %v46_v19 }
  0x27   :  { %50 = vst [vmem:[#allocation5] sm:$0x3] %v49_v21 }
  0x28   :  { %104 = shalt.err (!%p101_p12)
}
  0x29   :  { %s105_s24 = scalar_lea.hbm %s159_s1, 32 }
  0x2a   :  { %p106_p13 = scmp.ne.s32.totalorder %s159_s1, %s105_s24  ;;  %p109_p0 = scmp.lt.u32.totalorder %s105_s24, %s159_s1 }
  0x2c   :  { %p111_p1 = pnand %p109_p0, %p106_p13 }
  0x2e   :  { %114 = shalt.err (!%p111_p1)
}
  0x2f   :  { %60 = dma.vmem_to_hbm [thread:$0]  %s58_s20, 32, %s159_s1, [#allocation4]  }
  0x30   :  { %117 = dma.done.wait [#allocation4], 32  }
  0x31   :  { %118 = vsyncadd [#allocation4], 4294967264 }
  0x32   :  { %64 = vsyncpa [#allocation3], 1 }
  0x33   :  { %65 = vsyncpa [#allocation4], 1 }

</bundles_post_ra>
